<compile_context>
chip_gen: v7x
topology: tpu7x:2x2x1
jax: 0.10.0
libtpu: 0.0.40
codegen_flags: <defaults>
</compile_context>

<pallas_src>
import functools

import jax
import jax.numpy as jnp
from jax import lax
from jax.experimental import pallas as pl
from jax.experimental.pallas import tpu as pltpu


# ---------------------------------------------------------------------------
# Helpers
# ---------------------------------------------------------------------------
def _round_up(x, m):
    return (x + m - 1) // m * m


def _pad_to(x, shape):
    pads = [(0, t - s) for s, t in zip(x.shape, shape)]
    if all(p == (0, 0) for p in pads):
        return x
    return jnp.pad(x, pads)


def _derive_batch_tile(Kp, Vdp, Qdp, Hp, Hc, op_bytes, budget_bytes):
    """Largest multiple-of-8 batch tile whose working set fits the VMEM budget."""
    # Resident (single-buffered) weights + biases + wl row.
    resident = (Vdp * Hp + Qdp * Hp + 3 * Hp) * op_bytes
    # Per-batch-row footprint of one grid step.
    per_row = (2 * Kp * Vdp * op_bytes      # v tile, double-buffered
               + 2 * Qdp * op_bytes         # q tile, double-buffered
               + 2 * Kp * 4                 # out tile (f32), double-buffered
               + 2 * Kp * Hc * 4            # vp chunk + broadcast product (f32)
               + 3 * Kp * 4                 # logits / exp / softmax temps
               + 2 * Hc * 4)                # qp chunk, s chunk
    avail = budget_bytes - resident
    if avail <= per_row * 8:
        return 8
    return int(min(512, (avail // per_row) // 8 * 8))


# ---------------------------------------------------------------------------
# Kernel + wrapper
# ---------------------------------------------------------------------------
def new_attention(v, q, params, *, operand_dtype=None, approx_recip=True,
                  vmem_budget_bytes=None):
    """softmax_k( Linear( ReLU(vW_v+b_v) * ReLU(qW_q+b_q) ) ), returns [B,K,1]."""
    B, K, Vd = v.shape
    Qd = q.shape[1]
    H = params["wv"].shape[1]

    # ---- padded, hardware-friendly shapes ---------------------------------
    Kp = _round_up(K, 8)            # sublane-aligned -> free reshape in kernel
    Vdp = _round_up(Vd, 128)        # lane / MXU width
    Qdp = _round_up(Qd, 128)
    Hp = _round_up(H, 128)

    # H-reduction chunk (bounds live vregs/VMEM for large H).
    if Hp <= 256:
        Hc = Hp
    elif Hp % 256 == 0:
        Hc = 256
    else:
        Hc = 128
    n_chunks = Hp // Hc

    op_dtype = operand_dtype if operand_dtype is not None else v.dtype
    op_bytes = jnp.dtype(op_dtype).itemsize

    # ---- per-generation VMEM budget -> batch tile -------------------------
    try:
        vmem_cap = int(pltpu.get_tpu_info().vmem_capacity_bytes)
    except Exception:
        vmem_cap = 64 * 1024 * 1024                      # conservative fallback
    vmem_limit = min(int(vmem_cap * 0.85), 100 * 1024 * 1024)
    budget = (int(vmem_limit * 0.85) if vmem_budget_bytes is None
              else int(vmem_budget_bytes))

    tb = _derive_batch_tile(Kp, Vdp, Qdp, Hp, Hc, op_bytes, budget)
    tb = min(tb, _round_up(B, 8))
    # Prefer >= 2 grid steps (pipelining + megacore) when the batch allows it.
    if B > 8 and pl.cdiv(B, tb) < 2:
        tb = _round_up(pl.cdiv(B, 2), 8)
    nb = pl.cdiv(B, tb)
    Bp = nb * tb

    # ---- pad & cast operands (padded weight cols / biases / wl are zero) ---
    v_p = _pad_to(v.astype(op_dtype), (Bp, Kp, Vdp))
    q_p = _pad_to(q.astype(op_dtype), (Bp, Qdp))
    wv = _pad_to(params["wv"].astype(op_dtype), (Vdp, Hp))
    bv = _pad_to(params["bv"].astype(op_dtype), (1, Hp))
    wq = _pad_to(params["wq"].astype(op_dtype), (Qdp, Hp))
    bq = _pad_to(params["bq"].astype(op_dtype), (1, Hp))
    wl = _pad_to(params["wl"].reshape(1, H).astype(op_dtype), (1, Hp))
    # bl cancels exactly in the softmax over k -> not passed to the kernel.

    def kernel(v_ref, q_ref, wv_ref, bv_ref, wq_ref, bq_ref, wl_ref, o_ref):
        TB = v_ref.shape[0]
        v2 = v_ref[...].reshape(TB * Kp, Vdp)     # free view: Kp % 8 == 0
        q_t = q_ref[...]

        def h_chunk(c, logits):
            h0 = pl.multiple_of(c * Hc, Hc)
            wv_c = wv_ref[:, pl.ds(h0, Hc)]
            bv_c = bv_ref[:, pl.ds(h0, Hc)]
            wq_c = wq_ref[:, pl.ds(h0, Hc)]
            bq_c = bq_ref[:, pl.ds(h0, Hc)]
            wl_c = wl_ref[:, pl.ds(h0, Hc)]
            # v_proj = ReLU(v @ Wv + bv)   (MXU, f32 accumulation)
            vp = jnp.maximum(
                jnp.dot(v2, wv_c, preferred_element_type=jnp.float32) + bv_c, 0.0)
            # q_proj = ReLU(q @ Wq + bq)
            qp = jnp.maximum(
                jnp.dot(q_t, wq_c, preferred_element_type=jnp.float32) + bq_c, 0.0)
            # Fold the width-1 output projection into a broadcast factor:
            #   logits[b,k] += sum_h vp[b,k,h] * qp[b,h] * wl[h]
            s = qp * wl_c                                        # [TB, Hc] (VPU)
            return logits + jnp.sum(
                vp.reshape(TB, Kp, Hc) * s[:, None, :], axis=-1)  # VPU + XLU

        logits = lax.fori_loop(0, n_chunks, h_chunk,
                               jnp.zeros((TB, Kp), jnp.float32), unroll=True)

        # dropout(0.2): identity at inference time.

        if Kp != K:  # mask padded k positions so they get zero softmax weight
            col = lax.broadcasted_iota(jnp.int32, (TB, Kp), 1)
            logits = jnp.where(col < K, logits, jnp.float32(-1e30))

        # softmax over the k axis (f32 epilogue on every generation)
        m = jnp.max(logits, axis=-1, keepdims=True)
        e = jnp.exp(logits - m)
        denom = jnp.sum(e, axis=-1, keepdims=True)
        if approx_recip:
            o_ref[...] = (e * pl.reciprocal(denom, approx=True)).astype(o_ref.dtype)
        else:
            o_ref[...] = (e / denom).astype(o_ref.dtype)

    out = pl.pallas_call(
        kernel,
        out_shape=jax.ShapeDtypeStruct((Bp, Kp), jnp.float32),
        grid=(nb,),
        in_specs=[
            pl.BlockSpec((tb, Kp, Vdp), lambda i: (i, 0, 0)),          # v tile
            pl.BlockSpec((tb, Qdp), lambda i: (i, 0)),                 # q tile
            # Whole-array VMEM residency: single-buffered, copied in once.
            pl.BlockSpec(memory_space=pltpu.MemorySpace.VMEM),         # Wv
            pl.BlockSpec(memory_space=pltpu.MemorySpace.VMEM),         # bv
            pl.BlockSpec(memory_space=pltpu.MemorySpace.VMEM),         # Wq
            pl.BlockSpec(memory_space=pltpu.MemorySpace.VMEM),         # bq
            pl.BlockSpec(memory_space=pltpu.MemorySpace.VMEM),         # wl row
        ],
        out_specs=pl.BlockSpec((tb, Kp), lambda i: (i, 0)),
        compiler_params=pltpu.CompilerParams(
            dimension_semantics=("parallel",),
            vmem_limit_bytes=vmem_limit,
        ),
    )(v_p, q_p, wv, bv, wq, bq, wl)

    return out[:B, :K][..., None]                                  # [B, K, 1]


# ---------------------------------------------------------------------------
# Parameter setup (deterministic, in-script) + plain-JAX reference
# ---------------------------------------------------------------------------
def _weight_norm_effective(v_weight, g):
    # weight_norm with dim=None: W = g * V / ||V||_F  (g is a scalar)
    return g * v_weight / jnp.sqrt(jnp.sum(v_weight ** 2))


def init_params(key, v_dim, q_dim, num_hid):
    assert num_hid == q_dim, "module's final Linear(q_dim,1) requires num_hid == q_dim"
    ks = jax.random.split(key, 8)
    scale = 0.1
    wv_v = jax.random.normal(ks[0], (v_dim, num_hid), jnp.float32) * scale
    wq_v = jax.random.normal(ks[1], (q_dim, num_hid), jnp.float32) * scale
    wl_v = jax.random.normal(ks[2], (num_hid, 1), jnp.float32) * scale
    params = {
        "wv": _weight_norm_effective(wv_v, jnp.float32(1.3)),
        "bv": jax.random.normal(ks[3], (1, num_hid), jnp.float32) * scale,
        "wq": _weight_norm_effective(wq_v, jnp.float32(0.7)),
        "bq": jax.random.normal(ks[4], (1, num_hid), jnp.float32) * scale,
        "wl": _weight_norm_effective(wl_v, jnp.float32(1.1)),
        "bl": jax.random.normal(ks[5], (1, 1), jnp.float32) * scale,
    }
    return params


def new_attention_ref(v, q, params):
    vp = jnp.maximum(jnp.einsum("bkd,dh->bkh", v, params["wv"]) + params["bv"], 0.0)
    qp = jnp.maximum(q @ params["wq"] + params["bq"], 0.0)
    joint = vp * qp[:, None, :]
    logits = jnp.einsum("bkh,ho->bko", joint, params["wl"]) + params["bl"][None]
    return jax.nn.softmax(logits, axis=1)


if __name__ == "__main__":
    # Small, module-consistent shapes; k and batch deliberately NOT multiples of
    # 8 so the padding + softmax-masking paths are exercised.
    batch, k, v_dim, q_dim, num_hid = 3, 6, 48, 32, 32

    key = jax.random.PRNGKey(0)
    k_v, k_q, k_p = jax.random.split(key, 3)
    v = jax.random.normal(k_v, (batch, k, v_dim), jnp.float32)
    q = jax.random.normal(k_q, (batch, q_dim), jnp.float32)
    params = init_params(k_p, v_dim, q_dim, num_hid)

    w_ref = new_attention_ref(v, q, params)

    # f32 operands (tight tolerance; approx EUP reciprocal in the softmax).
    w = new_attention(v, q, params)
    jax.block_until_ready(w)
    assert w.shape == (batch, k, 1)
    assert jnp.allclose(jnp.sum(w, axis=1), 1.0, atol=2e-3)
    assert jnp.allclose(w, w_ref, atol=2e-3, rtol=2e-3)

    # bf16 operands (v6e/v7x fast path): same kernel, looser tolerance.
    w_bf16 = new_attention(v, q, params, operand_dtype=jnp.bfloat16)
    jax.block_until_ready(w_bf16)
    assert w_bf16.shape == (batch, k, 1)
    assert jnp.allclose(w_bf16, w_ref, atol=3e-2, rtol=5e-2)

    print("KERNEL_OK")
</pallas_src>

<mosaic_0001>
module attributes {stable_mosaic.version = 11 : i64} {
  func.func @kernel(%arg0: i32, %arg1: memref<8x8x128xf32, #tpu.memory_space<vmem>>, %arg2: memref<8x128xf32, #tpu.memory_space<vmem>>, %arg3: memref<128x128xf32, #tpu.memory_space<vmem>>, %arg4: memref<1x128xf32, #tpu.memory_space<vmem>>, %arg5: memref<128x128xf32, #tpu.memory_space<vmem>>, %arg6: memref<1x128xf32, #tpu.memory_space<vmem>>, %arg7: memref<1x128xf32, #tpu.memory_space<vmem>>, %arg8: memref<8x8xf32, #tpu.memory_space<vmem>>) attributes {dimension_semantics = [#tpu.dimension_semantics<parallel>], iteration_bounds = array<i64: 1>, scalar_prefetch = 0 : i64, scratch_operands = 0 : i64, tpu.core_type = #tpu.core_type<tc>, window_params = [{transform_indices = @transform_0, window_bounds = array<i64: 8, 8, 128>}, {transform_indices = @transform_1, window_bounds = array<i64: 8, 128>}, {pipeline_mode = #tpu.pipeline_mode<synchronous>, transform_indices = @transform_2, window_bounds = array<i64: 128, 128>}, {pipeline_mode = #tpu.pipeline_mode<synchronous>, transform_indices = @transform_3, window_bounds = array<i64: 1, 128>}, {pipeline_mode = #tpu.pipeline_mode<synchronous>, transform_indices = @transform_4, window_bounds = array<i64: 128, 128>}, {pipeline_mode = #tpu.pipeline_mode<synchronous>, transform_indices = @transform_5, window_bounds = array<i64: 1, 128>}, {pipeline_mode = #tpu.pipeline_mode<synchronous>, transform_indices = @transform_6, window_bounds = array<i64: 1, 128>}, {transform_indices = @transform_7, window_bounds = array<i64: 8, 8>}]} {
    %c0 = arith.constant 0 : index
    %c0_0 = arith.constant 0 : index
    %c0_1 = arith.constant 0 : index
    %0 = vector.load %arg1[%c0, %c0_0, %c0_1] : memref<8x8x128xf32, #tpu.memory_space<vmem>>, vector<8x8x128xf32>
    %1 = vector.shape_cast %0 : vector<8x8x128xf32> to vector<64x128xf32>
    %c0_2 = arith.constant 0 : index
    %c0_3 = arith.constant 0 : index
    %2 = vector.load %arg2[%c0_2, %c0_3] : memref<8x128xf32, #tpu.memory_space<vmem>>, vector<8x128xf32>
    %cst = arith.constant 0.000000e+00 : f32
    %3 = vector.broadcast %cst : f32 to vector<8x8xf32>
    %c0_i32 = arith.constant 0 : i32
    %c128_i32 = arith.constant 128 : i32
    %4 = arith.muli %c0_i32, %c128_i32 : i32
    %5 = tpu.assume_multiple %4, 128 : i32
    %c0_4 = arith.constant 0 : index
    %6 = arith.index_cast %5 : i32 to index
    %7 = vector.load %arg3[%c0_4, %6] : memref<128x128xf32, #tpu.memory_space<vmem>>, vector<128x128xf32>
    %c0_5 = arith.constant 0 : index
    %8 = arith.index_cast %5 : i32 to index
    %9 = vector.load %arg4[%c0_5, %8] : memref<1x128xf32, #tpu.memory_space<vmem>>, vector<1x128xf32>
    %c0_6 = arith.constant 0 : index
    %10 = arith.index_cast %5 : i32 to index
    %11 = vector.load %arg5[%c0_6, %10] : memref<128x128xf32, #tpu.memory_space<vmem>>, vector<128x128xf32>
    %c0_7 = arith.constant 0 : index
    %12 = arith.index_cast %5 : i32 to index
    %13 = vector.load %arg6[%c0_7, %12] : memref<1x128xf32, #tpu.memory_space<vmem>>, vector<1x128xf32>
    %c0_8 = arith.constant 0 : index
    %14 = arith.index_cast %5 : i32 to index
    %15 = vector.load %arg7[%c0_8, %14] : memref<1x128xf32, #tpu.memory_space<vmem>>, vector<1x128xf32>
    %cst_9 = arith.constant dense<0.000000e+00> : vector<64x128xf32>
    %16 = tpu.matmul %1, %7, %cst_9 {dimension_numbers = #tpu.dot_dimension_numbers<[1], [0], [0], [1], [0, 0, 1, 1], [], []>} : vector<64x128xf32>, vector<128x128xf32>, vector<64x128xf32> -> vector<64x128xf32>
    %17 = vector.broadcast %9 : vector<1x128xf32> to vector<64x128xf32>
    %18 = arith.addf %16, %17 : vector<64x128xf32>
    %cst_10 = arith.constant 0.000000e+00 : f32
    %19 = vector.broadcast %cst_10 : f32 to vector<64x128xf32>
    %20 = arith.maximumf %18, %19 : vector<64x128xf32>
    %cst_11 = arith.constant dense<0.000000e+00> : vector<8x128xf32>
    %21 = tpu.matmul %2, %11, %cst_11 {dimension_numbers = #tpu.dot_dimension_numbers<[1], [0], [0], [1], [0, 0, 1, 1], [], []>} : vector<8x128xf32>, vector<128x128xf32>, vector<8x128xf32> -> vector<8x128xf32>
    %22 = vector.broadcast %13 : vector<1x128xf32> to vector<8x128xf32>
    %23 = arith.addf %21, %22 : vector<8x128xf32>
    %cst_12 = arith.constant 0.000000e+00 : f32
    %24 = vector.broadcast %cst_12 : f32 to vector<8x128xf32>
    %25 = arith.maximumf %23, %24 : vector<8x128xf32>
    %26 = vector.broadcast %15 : vector<1x128xf32> to vector<8x128xf32>
    %27 = arith.mulf %25, %26 : vector<8x128xf32>
    %28 = vector.shape_cast %20 : vector<64x128xf32> to vector<8x8x128xf32>
    %29 = vector.shape_cast %27 : vector<8x128xf32> to vector<8x1x128xf32>
    %30 = vector.broadcast %29 : vector<8x1x128xf32> to vector<8x8x128xf32>
    %31 = arith.mulf %28, %30 : vector<8x8x128xf32>
    %cst_13 = arith.constant dense<0.000000e+00> : vector<8x8xf32>
    %32 = vector.multi_reduction <add>, %31, %cst_13 [2] : vector<8x8x128xf32> to vector<8x8xf32>
    %33 = arith.addf %3, %32 : vector<8x8xf32>
    %c1_i32 = arith.constant 1 : i32
    %34 = tpu.iota {dimensions = array<i32: 1>} : vector<8x8xi32>
    %c6_i32 = arith.constant 6 : i32
    %35 = vector.broadcast %c6_i32 : i32 to vector<8x8xi32>
    %36 = arith.cmpi slt, %34, %35 : vector<8x8xi32>
    %cst_14 = arith.constant -1.000000e+30 : f32
    %37 = vector.broadcast %cst_14 : f32 to vector<8x8xf32>
    %38 = arith.select %36, %33, %37 : vector<8x8xi1>, vector<8x8xf32>
    %cst_15 = arith.constant dense<0xFF800000> : vector<8xf32>
    %39 = vector.multi_reduction <maximumf>, %38, %cst_15 [1] : vector<8x8xf32> to vector<8xf32>
    %40 = vector.shape_cast %39 : vector<8xf32> to vector<8x1xf32>
    %41 = vector.broadcast %40 : vector<8x1xf32> to vector<8x8xf32>
    %42 = arith.subf %38, %41 : vector<8x8xf32>
    %43 = math.exp %42 : vector<8x8xf32>
    %cst_16 = arith.constant dense<0.000000e+00> : vector<8xf32>
    %44 = vector.multi_reduction <add>, %43, %cst_16 [1] : vector<8x8xf32> to vector<8xf32>
    %45 = vector.shape_cast %44 : vector<8xf32> to vector<8x1xf32>
    %46 = tpu.reciprocal %45 {approx = true} : vector<8x1xf32> -> vector<8x1xf32>
    %47 = vector.broadcast %46 : vector<8x1xf32> to vector<8x8xf32>
    %48 = arith.mulf %43, %47 : vector<8x8xf32>
    %c0_17 = arith.constant 0 : index
    %c0_18 = arith.constant 0 : index
    %49 = vector.load %arg8[%c0_17, %c0_18] : memref<8x8xf32, #tpu.memory_space<vmem>>, vector<8x8xf32>
    tpu.vector_store %arg8[%c0_17, %c0_18], %48 {strides = array<i32>} : memref<8x8xf32, #tpu.memory_space<vmem>>, vector<8x8xf32>,
    return
  }
  func.func @transform_0(%arg0: i32) -> (i32, i32, i32) {
    %c0_i32 = arith.constant 0 : i32
    %c0_i32_0 = arith.constant 0 : i32
    %c0_i32_1 = arith.constant 0 : i32
    return %arg0, %c0_i32, %c0_i32_0 : i32, i32, i32
  }
  func.func @transform_1(%arg0: i32) -> (i32, i32) {
    %c0_i32 = arith.constant 0 : i32
    %c0_i32_0 = arith.constant 0 : i32
    return %arg0, %c0_i32 : i32, i32
  }
  func.func @transform_2(%arg0: i32) -> (i32, i32) {
    %c0_i32 = arith.constant 0 : i32
    %c0_i32_0 = arith.constant 0 : i32
    %c0_i32_1 = arith.constant 0 : i32
    return %c0_i32, %c0_i32_0 : i32, i32
  }
  func.func @transform_3(%arg0: i32) -> (i32, i32) {
    %c0_i32 = arith.constant 0 : i32
    %c0_i32_0 = arith.constant 0 : i32
    %c0_i32_1 = arith.constant 0 : i32
    return %c0_i32, %c0_i32_0 : i32, i32
  }
  func.func @transform_4(%arg0: i32) -> (i32, i32) {
    %c0_i32 = arith.constant 0 : i32
    %c0_i32_0 = arith.constant 0 : i32
    %c0_i32_1 = arith.constant 0 : i32
    return %c0_i32, %c0_i32_0 : i32, i32
  }
  func.func @transform_5(%arg0: i32) -> (i32, i32) {
    %c0_i32 = arith.constant 0 : i32
    %c0_i32_0 = arith.constant 0 : i32
    %c0_i32_1 = arith.constant 0 : i32
    return %c0_i32, %c0_i32_0 : i32, i32
  }
  func.func @transform_6(%arg0: i32) -> (i32, i32) {
    %c0_i32 = arith.constant 0 : i32
    %c0_i32_0 = arith.constant 0 : i32
    %c0_i32_1 = arith.constant 0 : i32
    return %c0_i32, %c0_i32_0 : i32, i32
  }
  func.func @transform_7(%arg0: i32) -> (i32, i32) {
    %c0_i32 = arith.constant 0 : i32
    %c0_i32_0 = arith.constant 0 : i32
    return %arg0, %c0_i32 : i32, i32
  }
}

</mosaic_0001>

<bundles_post_ra>
// kernel: tpu_custom_call.1
= control target key start
LH: loop header
LB: loop body
LE: loop exit
PB: predicated region body
PF: predicated region fallthrough
CT: control target
= control target key end

     0   :  { %12 = vsyncpa [#allocation3], 0  ;;  %s1018_s0 = inlined_call_operand.hbm [shape: f32[8,8,128], index: 0, kind: input, shape index: {}]   ;;  %s1019_s1 = inlined_call_operand.hbm [shape: f32[8,128], index: 1, kind: input, shape index: {}]   ;;  %s1020_s2 = inlined_call_operand.hbm [shape: f32[128,128], index: 2, kind: input, shape index: {}]   ;;  %s1021_s3 = inlined_call_operand.vmem [shape: f32[1,128], index: 3, kind: input, shape index: {}]   ;;  %s1022_s4 = inlined_call_operand.hbm [shape: f32[128,128], index: 4, kind: input, shape index: {}]   ;;  %s1023_s5 = inlined_call_operand.vmem [shape: f32[1,128], index: 5, kind: input, shape index: {}]   ;;  %s1024_s6 = inlined_call_operand.vmem [shape: f32[1,128], index: 6, kind: input, shape index: {}]   ;;  %s1025_s7 = inlined_call_operand.hbm [shape: f32[8,8], index: 7, kind: output, shape index: {}]  }
   0x1   :  { %13 = vsyncpa [#allocation6], 0 }
   0x2   :  { %14 = vsyncpa [#allocation9], 0 }
   0x3   :  { %15 = vsyncpa [#allocation4], 0  ;;  %s850_s24 = smov [#allocation5]   ;;  %s851_s26 = smov [#allocation2]  }
   0x4   :  { %s34_s25 = sshll.u32 %s850_s24, 4  ;;  %s21_s27 = sshll.u32 %s851_s26, 4  ;;  %s35_s25 = int_to_ptr.vmem [resolvable:$true] %s34_s25  ;;  %s901_s27 = int_to_ptr.vmem [resolvable:$true] %s21_s27 }
   0x5   :  { %s732_s30 = scalar_lea.hbm %s1019_s1, 128 }
   0x6   :  { %p733_p0 = scmp.ne.s32.totalorder %s1019_s1, %s732_s30  ;;  %p736_p1 = scmp.lt.u32.totalorder %s732_s30, %s1019_s1 }
   0x8   :  { %p738_p2 = pnand %p736_p1, %p733_p0 }
   0xa   :  { %741 = shalt.err (!%p738_p2)
}
   0xb   :  { %s742_s12 = scalar_lea.vmem %s35_s25, 128  ;;  %p747_p4 = scmp.lt.s32.totalorder %s35_s25, %s35_s25 }
   0xc   :  { %p743_p3 = scmp.ne.s32.totalorder %s35_s25, %s742_s12  ;;  %p748_p5 = scmp.lt.s32.totalorder %s742_s12, %s742_s12 }
   0xe   :  { %p749_p6 = por %p748_p5, %p747_p4 }
  0x10   :  { %p750_p7 = pnand %p749_p6, %p743_p3 }
  0x12   :  { %753 = shalt.err (!%p750_p7)
}
  0x13   :  { %37 = dma.hbm_to_vmem [thread:$0]  %s1019_s1, 128, %s35_s25, [#allocation6]  }
  0x14   :  { %s754_s17 = scalar_lea.hbm %s1018_s0, 1024 }
  0x15   :  { %p755_p8 = scmp.ne.s32.totalorder %s1018_s0, %s754_s17  ;;  %p758_p9 = scmp.lt.u32.totalorder %s754_s17, %s1018_s0 }
  0x17   :  { %p760_p10 = pnand %p758_p9, %p755_p8 }
  0x19   :  { %763 = shalt.err (!%p760_p10)
}
  0x1a   :  { %s764_s22 = scalar_lea.vmem %s901_s27, 1024  ;;  %p769_p12 = scmp.lt.s32.totalorder %s901_s27, %s901_s27 }
  0x1b   :  { %p765_p11 = scmp.ne.s32.totalorder %s901_s27, %s764_s22  ;;  %p770_p13 = scmp.lt.s32.totalorder %s764_s22, %s764_s22 }
  0x1d   :  { %p771_p0 = por %p770_p13, %p769_p12 }
  0x1f   :  { %p772_p1 = pnand %p771_p0, %p765_p11 }
  0x21   :  { %775 = shalt.err (!%p772_p1)
}
  0x22   :  { %s852_s1 = smov 128   ;;  %s853_s23 = smov 8  }
  0x23   :  { %27 = dma.hbm_to_vmem [thread:$0]  %s1018_s0, 1024, %s901_s27, [#allocation3], %s852_s1, %s852_s1, %s853_s23  }
  0x24   :  { %s854_s26 = smov [#allocation7]   ;;  %s855_s29 = smov [#allocation8]  }
  0x25   :  { %s43_s28 = sshll.u32 %s854_s26, 4  ;;  %s57_s30 = sshll.u32 %s855_s29, 4  ;;  %s44_s28 = int_to_ptr.vmem [resolvable:$true] %s43_s28  ;;  %s935_s30 = int_to_ptr.vmem [resolvable:$true] %s57_s30 }
  0x26   :  { %s776_s10 = scalar_lea.hbm %s1020_s2, 2048 }
  0x27   :  { %p777_p2 = scmp.ne.s32.totalorder %s1020_s2, %s776_s10  ;;  %p780_p3 = scmp.lt.u32.totalorder %s776_s10, %s1020_s2 }
  0x29   :  { %p782_p4 = pnand %p780_p3, %p777_p2 }
  0x2b   :  { %785 = shalt.err (!%p782_p4)
}
  0x2c   :  { %s786_s0 = scalar_lea.vmem %s44_s28, 2048  ;;  %p791_p6 = scmp.lt.s32.totalorder %s44_s28, %s44_s28 }
  0x2d   :  { %p787_p5 = scmp.ne.s32.totalorder %s44_s28, %s786_s0  ;;  %p792_p7 = scmp.lt.s32.totalorder %s786_s0, %s786_s0 }
  0x2f   :  { %p793_p8 = por %p792_p7, %p791_p6 }
  0x31   :  { %p794_p9 = pnand %p793_p8, %p787_p5 }
  0x33   :  { %797 = shalt.err (!%p794_p9)
}
  0x34   :  { %49 = dma.hbm_to_vmem [thread:$0]  %s1020_s2, 2048, %s44_s28, [#allocation6], %s852_s1, %s852_s1, %s853_s23  }
  0x35   :  { %s798_s18 = scalar_lea.hbm %s1022_s4, 2048 }
  0x36   :  { %p799_p10 = scmp.ne.s32.totalorder %s1022_s4, %s798_s18  ;;  %p802_p11 = scmp.lt.u32.totalorder %s798_s18, %s1022_s4 }
  0x38   :  { %p804_p12 = pnand %p802_p11, %p799_p10 }
  0x3a   :  { %807 = shalt.err (!%p804_p12)
}
  0x3b   :  { %s808_s24 = scalar_lea.vmem %s935_s30, 2048  ;;  %p813_p0 = scmp.lt.s32.totalorder %s935_s30, %s935_s30 }
  0x3c   :  { %p809_p13 = scmp.ne.s32.totalorder %s935_s30, %s808_s24  ;;  %p814_p1 = scmp.lt.s32.totalorder %s808_s24, %s808_s24 }
  0x3e   :  { %p815_p2 = por %p814_p1, %p813_p0 }
  0x40   :  { %p816_p3 = pnand %p815_p2, %p809_p13 }
  0x42   :  { %819 = shalt.err (!%p816_p3)
}
  0x43   :  { %63 = dma.hbm_to_vmem [thread:$0]  %s1022_s4, 2048, %s935_s30, [#allocation9], %s852_s1, %s852_s1, %s853_s23  }
  0x44   :  { %842 = dma.done.wait [#allocation3], 1024  }
  0x45   :  { %843 = vsyncadd [#allocation3], 4294966272 }
  0x46   :  { %844 = dma.done.wait [#allocation6], 2176  }
  0x47   :  { %845 = vsyncadd [#allocation6], 4294965120 }
  0x48   :  { %846 = dma.done.wait [#allocation9], 2048  }
  0x49   :  { %847 = vsyncadd [#allocation9], 4294965248  ;;  %v856_v0 = vmov 0.0|0.0   ;;  %vm857_vm0 = vmmov 0   ;;  %v858_v1 = vmov 0.0   ;;  %v89_v2 = vld [vmem:[#allocation7] sm:$0xff]  ;;  %v332_v59 = vlaneseq }
  0x4a   :  { %693 = vmatprep.subr.bf16.mxu1 %v856_v0  ;;  %658 = vmatprep.mubr.msk.f32.mxu1 %vm857_vm0, %v858_v1  ;;  %v90_v3 = vld [vmem:[#allocation7 + $0x8] sm:$0xff]  ;;  %v106_v4 = vld [vmem:[#allocation8] sm:$0xff]  ;;  %v91_v7 = vld [vmem:[#allocation7 + $0x10] sm:$0xff]  ;;  %v859_v63 = vmov 1966171168   ;;  %vm492_vm1 = vcmask 1041409  }
  0x4b   :  { %v661_v5 = vpack.c.bf16 %v90_v3, %v89_v2  ;;  %v107_v6 = vld [vmem:[#allocation8 + $0x8] sm:$0xff]  ;;  %v92_v8 = vld [vmem:[#allocation7 + $0x18] sm:$0xff]  ;;  %v108_v11 = vld [vmem:[#allocation8 + $0x10] sm:$0xff]  ;;  %v333_v60 = vshrl.u32 %v332_v59, 7  ;;  %v980_v61 = vand.u32 127, %v332_v59  ;;  %vm494_vm2 = vcmask 1042434  }
  0x4c   :  { %v694_v9 = vpack.c.bf16 %v107_v6, %v106_v4  ;;  %v665_v10 = vpack.c.bf16 %v92_v8, %v91_v7  ;;  %v109_v12 = vld [vmem:[#allocation8 + $0x18] sm:$0xff]  ;;  %v93_v13 = vld [vmem:[#allocation7 + $0x20] sm:$0xff]  ;;  %v94_v14 = vld [vmem:[#allocation7 + $0x28] sm:$0xff]  ;;  %vm496_vm3 = vcmask 1043459   ;;  %vm498_vm4 = vcmask 1044484  }
  0x4d   :  { %662 = vmatprep.subr.bf16.mxu0 %v661_v5  ;;  %v697_v15 = vpack.c.bf16 %v109_v12, %v108_v11  ;;  %v669_v16 = vpack.c.bf16 %v94_v14, %v93_v13  ;;  %v110_v17 = vld [vmem:[#allocation8 + $0x20] sm:$0xff]  ;;  %v111_v18 = vld [vmem:[#allocation8 + $0x28] sm:$0xff]  ;;  %v95_v19 = vld [vmem:[#allocation7 + $0x30] sm:$0xff]  ;;  %v983_v62 = vsub.s32 %v980_v61, %v333_v60  ;;  %vm500_vm5 = vcmask 1045509  }
  0x4e   :  { %695 = vmatpush3.bf16.msra.mxu1 %v694_v9  ;;  %664 = vmatpush3.bf16.msra.mxu0 %v661_v5  ;;  %v96_v20 = vld [vmem:[#allocation7 + $0x38] sm:$0xff]  ;;  %v700_v21 = vpack.c.bf16 %v111_v18, %v110_v17  ;;  %v112_v23 = vld [vmem:[#allocation8 + $0x30] sm:$0xff]  ;;  %v97_v25 = vld [vmem:[#allocation7 + $0x40] sm:$0xff]  ;;  %vm502_vm6 = vcmask 1046534   ;;  %vm504_vm7 = vcmask 1047559   ;;  %vm451_vm8 = vcmp.lt.s32.totalorder %v980_v61, 6 }
  0x4f   :  { %696 = vmatprep.subr.bf16.mxu1 %v856_v0  ;;  %666 = vmatprep.subr.bf16.mxu0 %v665_v10  ;;  %v673_v22 = vpack.c.bf16 %v96_v20, %v95_v19  ;;  %v113_v24 = vld [vmem:[#allocation8 + $0x38] sm:$0xff]  ;;  %v98_v26 = vld [vmem:[#allocation7 + $0x48] sm:$0xff]  ;;  %v114_v30 = vld [vmem:[#allocation8 + $0x40] sm:$0xff]  ;;  %v379_v19 = vsub.s32 0, %v333_v60  ;;  %vm508_vm9 = vcmask 64512  }
  0x50   :  { %v80_v27 = vld [vmem:[#allocation2] sm:$0xff]  ;;  %v703_v28 = vpack.c.bf16 %v113_v24, %v112_v23  ;;  %v677_v29 = vpack.c.bf16 %v98_v26, %v97_v25  ;;  %v115_v31 = vld [vmem:[#allocation8 + $0x48] sm:$0xff]  ;;  %v99_v32 = vld [vmem:[#allocation7 + $0x50] sm:$0xff] }
  0x51   :  { %614 = vmatprep.mubr.f32.mxu0 %v80_v27  ;;  %v100_v33 = vld [vmem:[#allocation7 + $0x58] sm:$0xff]  ;;  %v706_v34 = vpack.c.bf16 %v115_v31, %v114_v30  ;;  %v116_v36 = vld [vmem:[#allocation8 + $0x50] sm:$0xff]  ;;  %v101_v38 = vld [vmem:[#allocation7 + $0x60] sm:$0xff] }
  0x52   :  { %698 = vmatpush3.bf16.msra.mxu1 %v697_v15  ;;  %668 = vmatpush3.bf16.msra.mxu0 %v665_v10  ;;  %v681_v35 = vpack.c.bf16 %v100_v33, %v99_v32  ;;  %v117_v37 = vld [vmem:[#allocation8 + $0x58] sm:$0xff]  ;;  %v102_v39 = vld [vmem:[#allocation7 + $0x68] sm:$0xff]  ;;  %v118_v42 = vld [vmem:[#allocation8 + $0x60] sm:$0xff] }
  0x53   :  { %699 = vmatprep.subr.bf16.mxu1 %v856_v0  ;;  %670 = vmatprep.subr.bf16.mxu0 %v669_v16  ;;  %v709_v40 = vpack.c.bf16 %v117_v37, %v116_v36  ;;  %v685_v41 = vpack.c.bf16 %v102_v39, %v101_v38  ;;  %v119_v43 = vld [vmem:[#allocation8 + $0x68] sm:$0xff]  ;;  %v103_v44 = vld [vmem:[#allocation7 + $0x70] sm:$0xff]  ;;  %v104_v45 = vld [vmem:[#allocation7 + $0x78] sm:$0xff] }
  0x54   :  { %v712_v46 = vpack.c.bf16 %v119_v43, %v118_v42  ;;  %v689_v47 = vpack.c.bf16 %v104_v45, %v103_v44  ;;  %v120_v48 = vld [vmem:[#allocation8 + $0x70] sm:$0xff]  ;;  %v121_v49 = vld [vmem:[#allocation8 + $0x78] sm:$0xff]  ;;  %v81_v52 = vld [vmem:[#allocation2 + $0x8] sm:$0xff] }
  0x55   :  { %v715_v50 = vpack.c.bf16 %v121_v49, %v120_v48  ;;  %v88_v51 = vld [vmem:[#allocation5] sm:$0xff]  ;;  %v82_v53 = vld [vmem:[#allocation2 + $0x10] sm:$0xff]  ;;  %v83_v54 = vld [vmem:[#allocation2 + $0x18] sm:$0xff] }
  0x56   :  { %701 = vmatpush3.bf16.msra.mxu1 %v700_v21  ;;  %672 = vmatpush3.bf16.msra.mxu0 %v669_v16  ;;  %v84_v55 = vld [vmem:[#allocation2 + $0x20] sm:$0xff]  ;;  %v85_v56 = vld [vmem:[#allocation2 + $0x28] sm:$0xff]  ;;  %v86_v57 = vld [vmem:[#allocation2 + $0x30] sm:$0xff] }
  0x57   :  { %702 = vmatprep.subr.bf16.mxu1 %v856_v0  ;;  %674 = vmatprep.subr.bf16.mxu0 %v673_v22  ;;  %v87_v58 = vld [vmem:[#allocation2 + $0x38] sm:$0xff]  ;;  %v539_v1 = vld [vmem:[%s1023_s5] ss:$0 sm:$0xff] }
  0x58   :  { %v540_v8 = vld [vmem:[%s1024_s6] ss:$0 sm:$0xff] }
  0x59   :  { %v538_v11 = vld [vmem:[%s1021_s3] ss:$0 sm:$0xff]  ;;  %s860_s3 = smov [#allocation10]  }
  0x5a   :  { %704 = vmatpush3.bf16.msra.mxu1 %v703_v28  ;;  %676 = vmatpush3.bf16.msra.mxu0 %v673_v22  ;;  %s527_s5 = sshll.u32 %s860_s3, 4  ;;  %s528_s5 = int_to_ptr.vmem [resolvable:$true] %s527_s5 }
  0x5b   :  { %705 = vmatprep.subr.bf16.mxu1 %v856_v0  ;;  %678 = vmatprep.subr.bf16.mxu0 %v677_v29  ;;  %s820_s6 = scalar_lea.vmem %s528_s5, 128  ;;  %p825_p5 = scmp.lt.s32.totalorder %s528_s5, %s528_s5 }
  0x5c   :  { %p821_p4 = scmp.ne.s32.totalorder %s528_s5, %s820_s6  ;;  %p826_p6 = scmp.lt.s32.totalorder %s820_s6, %s820_s6 }
  0x5e   :  { %707 = vmatpush3.bf16.msra.mxu1 %v706_v34  ;;  %680 = vmatpush3.bf16.msra.mxu0 %v677_v29  ;;  %p827_p7 = por %p826_p6, %p825_p5 }
  0x5f   :  { %708 = vmatprep.subr.bf16.mxu1 %v856_v0  ;;  %682 = vmatprep.subr.bf16.mxu0 %v681_v35 }
  0x60   :  { %p828_p8 = pnand %p827_p7, %p821_p4 }
  0x62   :  { %710 = vmatpush3.bf16.msra.mxu1 %v709_v40  ;;  %684 = vmatpush3.bf16.msra.mxu0 %v681_v35 }
  0x63   :  { %711 = vmatprep.subr.bf16.mxu1 %v856_v0  ;;  %686 = vmatprep.subr.bf16.mxu0 %v685_v41 }
  0x66   :  { %713 = vmatpush3.bf16.msra.mxu1 %v712_v46  ;;  %688 = vmatpush3.bf16.msra.mxu0 %v685_v41 }
  0x67   :  { %714 = vmatprep.subr.bf16.mxu1 %v856_v0  ;;  %690 = vmatprep.subr.bf16.mxu0 %v689_v47  ;;  %v330_v0 = vunpack.c.l.s4 %v859_v63 }
  0x69   :  { %v331_v2 = vunpack.c.0.s8 %v330_v0 }
  0x6a   :  { %716 = vmatpush3.bf16.msra.mxu1 %v715_v50  ;;  %692 = vmatpush3.bf16.msra.mxu0 %v689_v47 }
  0x6b   :  { %v334_v10 = vsub.s32 %v331_v2, %v333_v60 }
  0x6d   :  { %659 = vmatmul.mubr.f32.vlgmr.msra.gmra.mrb[0].mxu1 %v88_v51  ;;  %615 = vmatmul.mubr.f32.vlgmr.msra.gmra.mrb[0].mxu0 %v81_v52 }
  0x6e   :  { %617 = vmatprep.mubr.f32.mxu0 %v82_v53 }
  0x71   :  { %618 = vmatmul.mubr.f32.gmra.mrb[2].mxu0 %v83_v54 }
  0x72   :  { %620 = vmatprep.mubr.f32.mxu0 %v84_v55 }
  0x75   :  { %621 = vmatmul.mubr.f32.gmra.mrb[4].mxu0 %v85_v56 }
  0x76   :  { %623 = vmatprep.mubr.f32.mxu0 %v86_v57 }
  0x79   :  { %624 = vmatmul.mubr.f32.gmra.mrb[6].mxu0 %v87_v58 }
 0x140   :  { %v315_v3 = vpop.f32.mrb[0].mxu1  ;;  %v616_v4 = vpop.f32.mrb[0].mxu0 }
 0x141   :  { %v316_v5 = vadd.f32 %v539_v1, %v315_v3  ;;  %v660_v6 = vpop.f32.mrb[1].mxu1  ;;  %v196_v7 = vpop.f32.mrb[1].mxu0  ;;  %v202_v15 = vadd.f32 %v616_v4, %v538_v11 }
 0x142   :  { %v197_v16 = vadd.f32 %v538_v11, %v196_v7 }
 0x143   :  { %v319_v9 = vmax.f32 %v316_v5, 0.0  ;;  %v236_v27 = vmax.f32 %v202_v15, 0.0 }
 0x144   :  { %v619_v12 = vpop.f32.mrb[2].mxu0  ;;  %v235_v28 = vmax.f32 %v197_v16, 0.0 }
 0x145   :  { %v326_v13 = vmul.f32 %v540_v8, %v319_v9  ;;  %v206_v14 = vpop.f32.mrb[3].mxu0  ;;  %v212_v29 = vadd.f32 %v619_v12, %v538_v11 }
 0x146   :  { %v207_v20 = vadd.f32 %v538_v11, %v206_v14 }
 0x147   :  { %v328_v17 = vcombine.high %v326_v13, %v326_v13  ;;  %v335_v18 = vrot.slane %v326_v13, %v334_v10  ;;  %v238_v49 = vmax.f32 %v212_v29, 0.0 }
 0x148   :  { %v622_v21 = vpop.f32.mrb[4].mxu0  ;;  %v237_v31 = vmax.f32 %v207_v20, 0.0 }
 0x149   :  { %v342_v22 = vrot.slane %v328_v17, %v334_v10  ;;  %v343_v23 = vcombine.high %v335_v18, %v335_v18  ;;  %v222_v24 = vadd.f32 %v622_v21, %v538_v11  ;;  %v216_v25 = vpop.f32.mrb[5].mxu0  ;;  %v351_v26 = vrot.slane %v335_v18, %v334_v10 }
 0x14a   :  { %v217_v30 = vadd.f32 %v538_v11, %v216_v25 }
 0x14b   :  { %v380_v32 = vrot.slane %v351_v26, %v379_v19  ;;  %v373_v33 = vcombine.high %v351_v26, %v351_v26  ;;  %v365_v34 = vrot.slane %v343_v23, %v334_v10  ;;  %v240_v35 = vmax.f32 %v222_v24, 0.0 }
 0x14c   :  { %v239_v36 = vmax.f32 %v217_v30, 0.0  ;;  %v625_v37 = vpop.f32.mrb[6].mxu0  ;;  %v358_v38 = vrot.slane %v342_v22, %v334_v10  ;;  %v344_v39 = vcombine.high %v342_v22, %v342_v22 }
 0x14d   :  { %v232_v40 = vadd.f32 %v625_v37, %v538_v11  ;;  %v226_v41 = vpop.f32.mrb[7].mxu0  ;;  %v417_v42 = vmul.f32 %v380_v32, %v235_v28  ;;  %v388_v43 = vrot.slane %v373_v33, %v379_v19  ;;  %v384_v44 = vrot.slane %v365_v34, %v379_v19 }
 0x14e   :  { %v227_v45 = vadd.f32 %v538_v11, %v226_v41  ;;  %v375_v46 = vcombine.high %v365_v34, %v365_v34  ;;  %v396_v47 = vrot.slane %v358_v38, %v379_v19  ;;  %v372_v48 = vrot.slane %v344_v39, %v334_v10 }
 0x14f   :  { %425 = vadd.xlane.f32.xlu0 %v417_v42  ;;  %v419_v50 = vmul.f32 %v388_v43, %v237_v31  ;;  %v418_v51 = vmul.f32 %v384_v44, %v236_v27  ;;  %v374_v52 = vcombine.high %v358_v38, %v358_v38  ;;  %v242_v57 = vmax.f32 %v232_v40, 0.0 }
 0x150   :  { %v241_v53 = vmax.f32 %v227_v45, 0.0  ;;  %v392_v54 = vrot.slane %v375_v46, %v379_v19  ;;  %v421_v55 = vmul.f32 %v396_v47, %v239_v36  ;;  %v400_v56 = vrot.slane %v372_v48, %v379_v19 }
 0x151   :  { %429 = vadd.xlane.f32.xlu1 %v419_v50  ;;  %v404_v58 = vrot.slane %v374_v52, %v379_v19  ;;  %v376_v59 = vcombine.high %v372_v48, %v372_v48 }
 0x152   :  { %v420_v60 = vmul.f32 %v392_v54, %v238_v49  ;;  %v422_v63 = vmul.f32 %v400_v56, %v240_v35 }
 0x153   :  { %427 = vadd.xlane.f32.xlu0 %v418_v51  ;;  %v423_v0 = vmul.f32 %v404_v58, %v241_v53  ;;  %v408_v1 = vrot.slane %v376_v59, %v379_v19 }
 0x155   :  { %431 = vadd.xlane.f32.xlu1 %v420_v60  ;;  %v424_v2 = vmul.f32 %v408_v1, %v242_v57 }
 0x157   :  { %433 = vadd.xlane.f32.xlu0 %v421_v55 }
 0x159   :  { %435 = vadd.xlane.f32.xlu1 %v422_v63 }
 0x15b   :  { %437 = vadd.xlane.f32.xlu0 %v423_v0 }
 0x15d   :  { %439 = vadd.xlane.f32.xlu1 %v424_v2 }
 0x1dc   :  { %v426_v3 = vpop.xlane.xlu0 %425 }
 0x1dd   :  { %v463_v6 = vrot.slane %v426_v3, %v983_v62 }
 0x1de   :  { %v430_v4 = vpop.xlane.xlu1 %429 }
 0x1df   :  { %v471_v8 = vrot.slane %v430_v4, %v983_v62 }
 0x1e0   :  { %v428_v5 = vpop.xlane.xlu0 %427 }
 0x1e1   :  { %v467_v7 = vrot.slane %v428_v5, %v983_v62 }
 0x1e2   :  { %v432_v9 = vpop.xlane.xlu1 %431 }
 0x1e3   :  { %v493_v10 = vsel %vm492_vm1, %v467_v7, %v463_v6  ;;  %v475_v11 = vrot.slane %v432_v9, %v983_v62 }
 0x1e4   :  { %v495_v12 = vsel %vm494_vm2, %v471_v8, %v493_v10  ;;  %v434_v13 = vpop.xlane.xlu0 %433 }
 0x1e5   :  { %v497_v14 = vsel %vm496_vm3, %v475_v11, %v495_v12  ;;  %v479_v15 = vrot.slane %v434_v13, %v983_v62 }
 0x1e6   :  { %v436_v16 = vpop.xlane.xlu1 %435 }
 0x1e7   :  { %v499_v17 = vsel %vm498_vm4, %v479_v15, %v497_v14  ;;  %v483_v18 = vrot.slane %v436_v16, %v983_v62 }
 0x1e8   :  { %v438_v19 = vpop.xlane.xlu0 %437 }
 0x1e9   :  { %v501_v20 = vsel %vm500_vm5, %v483_v18, %v499_v17  ;;  %v487_v21 = vrot.slane %v438_v19, %v983_v62 }
 0x1ea   :  { %v440_v22 = vpop.xlane.xlu1 %439 }
 0x1eb   :  { %v491_v23 = vrot.slane %v440_v22, %v983_v62  ;;  %v503_v24 = vsel %vm502_vm6, %v487_v21, %v501_v20 }
 0x1ed   :  { %v505_v25 = vsel %vm504_vm7, %v491_v23, %v503_v24 }
 0x1ee   :  { %v507_v26 = vsel %vm451_vm8, %v505_v25, -1e+30 }
 0x1ef   :  { %v509_v27 = vsel %vm508_vm9, %v507_v26, -inf }
 0x1f0   :  { %510 = vmax.xlane.f32.xlu0 %v509_v27 }
 0x27d   :  { %v511_v28 = vpop.xlane.xlu0 %510 }
 0x27e   :  { %v512_v29 = vsub.f32 %v507_v26, %v511_v28 }
 0x280   :  { %v513_v30 = vmul.f32 1.442695, %v512_v29 }
 0x282   :  { %728 = vpow2.f32 %v513_v30 }
 0x28c   :  { %v729_v31 = vpop.eup %728 }
 0x28d   :  { %v515_v32 = vsel %vm508_vm9, %v729_v31, 0.0 }
 0x28e   :  { %516 = vadd.xlane.f32.xlu1 %v515_v32 }
 0x31b   :  { %v517_v33 = vpop.xlane.xlu1 %516 }
 0x31c   :  { %730 = vrcp.f32 %v517_v33 }
 0x326   :  { %v731_v61 = vpop.eup %730 }
 0x327   :  { %v519_v62 = vmul.f32 %v731_v61, %v729_v31 }
 0x329   :  { %520 = vst.msk [vmem:[#allocation10] sm:$0xff] %vm508_vm9, %v519_v62 }
 0x32a   :  { %831 = shalt.err (!%p828_p8)
}
 0x32b   :  { %s832_s9 = scalar_lea.hbm %s1025_s7, 128 }
 0x32c   :  { %p833_p9 = scmp.ne.s32.totalorder %s1025_s7, %s832_s9  ;;  %p836_p10 = scmp.lt.u32.totalorder %s832_s9, %s1025_s7 }
 0x32e   :  { %p838_p11 = pnand %p836_p10, %p833_p9 }
 0x330   :  { %841 = shalt.err (!%p838_p11)
}
 0x331   :  { %530 = dma.vmem_to_hbm [thread:$0]  %s528_s5, 128, %s1025_s7, [#allocation4]  }
 0x332   :  { %848 = dma.done.wait [#allocation4], 128  }
 0x333   :  { %849 = vsyncadd [#allocation4], 4294967168 }
 0x334   :  { %534 = vsyncpa [#allocation3], 1 }
 0x335   :  { %535 = vsyncpa [#allocation6], 1 }
 0x336   :  { %536 = vsyncpa [#allocation9], 1 }
 0x337   :  { %537 = vsyncpa [#allocation4], 1 }

</bundles_post_ra>
